<compile_context>
chip_gen: v6e
topology: v6e:2x2x1
jax: 0.10.0
libtpu: 0.0.40
codegen_flags: <defaults>
</compile_context>

<pallas_src>
import functools
import math

import jax
import jax.numpy as jnp
from jax.experimental import pallas as pl
from jax.experimental.pallas import tpu as pltpu


# ----------------------------------------------------------------------------
# Parameter setup (mirrors the PyTorch __init__).
# ----------------------------------------------------------------------------
def _make_pe(d_model: int, max_len: int = 5000, dtype=jnp.float32):
    """Deterministic sinusoidal table, identical to the PyTorch __init__."""
    position = jnp.arange(max_len, dtype=jnp.float32)[:, None]              # [L, 1]
    div_term = jnp.exp(
        jnp.arange(0, d_model, 2, dtype=jnp.float32) * (-math.log(10000.0) / d_model)
    )                                                                        # [D/2]
    ang = position * div_term                                                # [L, D/2]
    pe = jnp.zeros((max_len, d_model), dtype=jnp.float32)
    pe = pe.at[:, 0::2].set(jnp.sin(ang))
    pe = pe.at[:, 1::2].set(jnp.cos(ang))
    return pe.astype(dtype)


# ----------------------------------------------------------------------------
# Kernels.
# ----------------------------------------------------------------------------
def _random_bits_i32(shape):
    """Uniform 32-bit random bits, viewed as int32 (signed compare is safest)."""
    raw = pltpu.prng_random_bits(shape)
    if jnp.issubdtype(raw.dtype, jnp.signedinteger):
        return raw
    return pltpu.bitcast(raw, jnp.int32)


def _dropout_body(y, bits_i32, threshold_i32, scale):
    # Inverted dropout with an integer-domain keep decision:
    #   keep  <=>  signed(uniform u32 bits) >= round(p*2^32) - 2^31
    keep = bits_i32 >= jnp.int32(threshold_i32)
    return jnp.where(keep, y * jnp.asarray(scale, y.dtype), jnp.zeros_like(y))


def _add_kernel(x_ref, pe_ref, o_ref):
    # Eval mode (dropout is identity): pure elementwise add.
    o_ref[...] = x_ref[...] + pe_ref[...]


def _add_bcast_kernel(x_ref, pe_ref, o_ref):
    # x: [ts, B, D]; pe: [ts, D] broadcast over batch inside the kernel
    # (no batch-expanded pe copy streamed from HBM).
    o_ref[...] = x_ref[...] + pe_ref[...][:, None, :]


def _add_dropout_prng_kernel(seed_ref, x_ref, pe_ref, o_ref, *, threshold_i32, scale):
    # In-kernel RNG: seed lives in SMEM (scalar prefetch); per-block decorrelate
    # with program_id so every tile gets an independent mask.
    pltpu.prng_seed(seed_ref[0], pl.program_id(0))
    bits = _random_bits_i32(x_ref.shape)
    o_ref[...] = _dropout_body(x_ref[...] + pe_ref[...], bits, threshold_i32, scale)


def _add_bcast_dropout_prng_kernel(seed_ref, x_ref, pe_ref, o_ref, *, threshold_i32, scale):
    pltpu.prng_seed(seed_ref[0], pl.program_id(0))
    bits = _random_bits_i32(x_ref.shape)
    o_ref[...] = _dropout_body(
        x_ref[...] + pe_ref[...][:, None, :], bits, threshold_i32, scale
    )


def _add_dropout_bits_kernel(x_ref, pe_ref, bits_ref, o_ref, *, threshold_i32, scale):
    # Fallback only (non-TPU backend): random bits streamed from the wrapper.
    o_ref[...] = _dropout_body(
        x_ref[...] + pe_ref[...], bits_ref[...], threshold_i32, scale
    )


# ----------------------------------------------------------------------------
# Tiling helpers.
# ----------------------------------------------------------------------------
def _sublane_quantum(dtype):
    """Packed sublane quantum: 8 rows for 4-byte, 16 for 2-byte, 32 for 1-byte."""
    return max(8, 32 // jnp.dtype(dtype).itemsize)


def _choose_block_rows(rows, row_bytes, quantum, n_streams, min_steps=4):
    """Row tile: ~2-4 MiB/buffer (stream-count aware), multiple of `quantum`
    (or the full extent), and capped so the grid keeps >= min_steps steps when
    possible so the "parallel" axis engages both v7x TensorCores."""
    target_bytes = min(4 << 20, max(1 << 20, (24 << 20) // (2 * n_streams)))
    if rows <= quantum:
        return int(rows)                       # full extent block (== array dim)
    blk = max(quantum, (target_bytes // max(row_bytes, 1)) // quantum * quantum)
    cap = (rows // min_steps) // quantum * quantum
    if cap >= quantum:
        blk = min(blk, cap)
    return int(min(blk, rows))


def _vmem_limit(stream_block_bytes):
    """Scoped-VMEM budget: double-buffered streams + headroom, clamped to a
    value that is safe on every generation (v5e 16 MiB default ... v7x 64 MiB)."""
    needed = 2 * sum(stream_block_bytes)
    return int(min(max(needed + (4 << 20), 16 << 20), 32 << 20))


def _compiler_params(vmem_limit):
    return pltpu.CompilerParams(
        dimension_semantics=("parallel",),     # independent tiles -> 2-TC split on v7x
        vmem_limit_bytes=int(vmem_limit),
    )


# ----------------------------------------------------------------------------
# Forward wrapper (matches PyTorch: dropout(x + pe[:x.size(0)])).
# ----------------------------------------------------------------------------
def positional_encoding_forward(x, pe, *, dropout_p=0.1, training=False, rng_key=None):
    """x: [S, D] or [S, B, D]; pe: [max_len, D] with max_len >= S."""
    if x.ndim not in (2, 3):
        raise ValueError("x must be [S, D] or [S, B, D]")
    S, D = x.shape[0], x.shape[-1]
    assert pe.shape[-1] == D and pe.shape[0] >= S

    use_dropout = bool(training) and float(dropout_p) > 0.0
    if use_dropout and float(dropout_p) >= 1.0:
        return jnp.zeros_like(x)               # torch Dropout(p=1.0) zeroes everything
    if use_dropout and rng_key is None:
        rng_key = jax.random.PRNGKey(0)

    p = float(dropout_p)
    threshold_i32 = max(-(1 << 31), min(int(round(p * 4294967296.0)) - (1 << 31),
                                        (1 << 31) - 1))
    scale = 1.0 / (1.0 - p) if use_dropout else 1.0
    drop_kw = dict(threshold_i32=threshold_i32, scale=scale)

    # pe slice; cast only when dtypes differ (build the table in the compute
    # dtype via _make_pe(dtype=...) to avoid even this one-off copy).
    pe_s = pe[:S]
    if pe_s.dtype != x.dtype:
        pe_s = pe_s.astype(x.dtype)

    in_kernel_rng = use_dropout and jax.default_backend() == "tpu"
    stream_bits = use_dropout and not in_kernel_rng
    itemsize = x.dtype.itemsize

    if use_dropout:
        seed = jax.random.randint(rng_key, (1,), 0, jnp.iinfo(jnp.int32).max,
                                  dtype=jnp.int32)

    # ---- 3-D [S, B, D]: tile over S, broadcast pe over batch in-kernel -----
    if x.ndim == 3 and not stream_bits:
        _, B, _ = x.shape
        ts = _choose_block_rows(S, B * D * itemsize, 8, n_streams=3)
        grid = (pl.cdiv(S, ts),)
        vmem = _vmem_limit([ts * B * D * itemsize, ts * D * itemsize,
                            ts * B * D * itemsize])
        if in_kernel_rng:
            x_spec = pl.BlockSpec((ts, B, D), lambda i, _: (i, 0, 0))
            pe_spec = pl.BlockSpec((ts, D), lambda i, _: (i, 0))
            return pl.pallas_call(
                functools.partial(_add_bcast_dropout_prng_kernel, **drop_kw),
                out_shape=jax.ShapeDtypeStruct(x.shape, x.dtype),
                grid_spec=pltpu.PrefetchScalarGridSpec(
                    num_scalar_prefetch=1, grid=grid,
                    in_specs=[x_spec, pe_spec], out_specs=x_spec),
                compiler_params=_compiler_params(vmem),
            )(seed, x, pe_s)
        x_spec = pl.BlockSpec((ts, B, D), lambda i: (i, 0, 0))
        pe_spec = pl.BlockSpec((ts, D), lambda i: (i, 0))
        return pl.pallas_call(
            _add_bcast_kernel,
            out_shape=jax.ShapeDtypeStruct(x.shape, x.dtype),
            grid=grid, in_specs=[x_spec, pe_spec], out_specs=x_spec,
            compiler_params=_compiler_params(vmem),
        )(x, pe_s)

    # ---- 2-D [S, D] (and non-TPU dropout fallback for any rank) ------------
    # Pure elementwise op over a contiguous slab -> lane-dense [N/128, 128]
    # layout when possible (avoids masked partial stores for D < 128).
    pe_full = pe_s if x.ndim == 2 else jnp.broadcast_to(pe_s[:, None, :], x.shape)
    N = x.size
    if N % 128 == 0:
        rows, cols = N // 128, 128
    else:
        # TODO(synk): cols = D < 128 hits masked partial stores; correct but slow.
        rows, cols = N // D, D
    x2 = x.reshape(rows, cols)
    pe2 = pe_full.reshape(rows, cols)

    quantum = _sublane_quantum(x.dtype)
    n_streams = 4 if stream_bits else 3
    br = _choose_block_rows(rows, cols * itemsize, quantum, n_streams)
    grid = (pl.cdiv(rows, br),)
    stream_bytes = [br * cols * itemsize] * 3          # x, pe, out
    if stream_bits:
        stream_bytes.append(br * cols * 4)             # streamed int32 bits
    vmem = _vmem_limit(stream_bytes)
    out_shape = jax.ShapeDtypeStruct((rows, cols), x.dtype)

    if not use_dropout:
        spec = pl.BlockSpec((br, cols), lambda i: (i, 0))
        out2 = pl.pallas_call(
            _add_kernel, out_shape=out_shape, grid=grid,
            in_specs=[spec, spec], out_specs=spec,
            compiler_params=_compiler_params(vmem),
        )(x2, pe2)
    elif in_kernel_rng:
        spec = pl.BlockSpec((br, cols), lambda i, _: (i, 0))
        out2 = pl.pallas_call(
            functools.partial(_add_dropout_prng_kernel, **drop_kw),
            out_shape=out_shape,
            grid_spec=pltpu.PrefetchScalarGridSpec(
                num_scalar_prefetch=1, grid=grid,
                in_specs=[spec, spec], out_specs=spec),
            compiler_params=_compiler_params(vmem),
        )(seed, x2, pe2)
    else:
        # Fallback (non-TPU backend, e.g. interpret mode): stream bits from the
        # wrapper, viewed as int32 so the same signed threshold applies.
        bits = jax.lax.bitcast_convert_type(
            jax.random.bits(rng_key, (rows, cols), dtype=jnp.uint32), jnp.int32)
        spec = pl.BlockSpec((br, cols), lambda i: (i, 0))
        out2 = pl.pallas_call(
            functools.partial(_add_dropout_bits_kernel, **drop_kw),
            out_shape=out_shape, grid=grid,
            in_specs=[spec, spec, spec], out_specs=spec,
            compiler_params=_compiler_params(vmem),
        )(x2, pe2, bits)

    return out2.reshape(x.shape)


# ----------------------------------------------------------------------------
# Demo / self-test.
# ----------------------------------------------------------------------------
if __name__ == "__main__":
    d_model = 32
    seq_len = 8
    max_len = 5000
    p = 0.1
    scale = 1.0 / (1.0 - p)

    key = jax.random.PRNGKey(0)
    kx, kb, k3, kd1, kd2, kd3 = jax.random.split(key, 6)

    pe = _make_pe(d_model, max_len=max_len, dtype=jnp.float32)

    # --- 2-D [S, D] at the module's natural demo size -----------------------
    x = jax.random.normal(kx, (seq_len, d_model), dtype=jnp.float32)
    ref = x + pe[:seq_len]

    out_eval = jax.block_until_ready(
        positional_encoding_forward(x, pe, dropout_p=p, training=False))
    assert out_eval.shape == x.shape and out_eval.dtype == x.dtype
    assert jnp.allclose(out_eval, ref, atol=1e-6, rtol=1e-6)

    out_train = jax.block_until_ready(
        positional_encoding_forward(x, pe, dropout_p=p, training=True, rng_key=kd1))
    ok = jnp.isclose(out_train, 0.0, atol=1e-6) | jnp.isclose(
        out_train, ref * scale, atol=1e-5, rtol=1e-5)
    assert bool(jnp.all(ok))

    # --- Larger 2-D shape: exercises multi-block grid + per-block seeding ---
    S2, D2 = 256, 128
    pe_big = _make_pe(D2, max_len=1024, dtype=jnp.float32)
    xb = jax.random.normal(kb, (S2, D2), dtype=jnp.float32)
    refb = xb + pe_big[:S2]

    outb_eval = jax.block_until_ready(
        positional_encoding_forward(xb, pe_big, dropout_p=p, training=False))
    assert jnp.allclose(outb_eval, refb, atol=1e-6, rtol=1e-6)

    outb_train = jax.block_until_ready(
        positional_encoding_forward(xb, pe_big, dropout_p=p, training=True, rng_key=kd2))
    okb = jnp.isclose(outb_train, 0.0, atol=1e-6) | jnp.isclose(
        outb_train, refb * scale, atol=1e-5, rtol=1e-5)
    assert bool(jnp.all(okb))
    drop_frac = float(jnp.mean(jnp.isclose(outb_train, 0.0, atol=1e-6)))
    assert 0.05 < drop_frac < 0.15, f"unexpected drop fraction {drop_frac}"

    # --- 3-D [S, B, D]: pe broadcast over batch inside the kernel -----------
    B = 2
    x3 = jax.random.normal(k3, (seq_len, B, d_model), dtype=jnp.float32)
    ref3 = x3 + pe[:seq_len][:, None, :]

    out3_eval = jax.block_until_ready(
        positional_encoding_forward(x3, pe, dropout_p=p, training=False))
    assert out3_eval.shape == x3.shape
    assert jnp.allclose(out3_eval, ref3, atol=1e-6, rtol=1e-6)

    out3_train = jax.block_until_ready(
        positional_encoding_forward(x3, pe, dropout_p=p, training=True, rng_key=kd3))
    ok3 = jnp.isclose(out3_train, 0.0, atol=1e-6) | jnp.isclose(
        out3_train, ref3 * scale, atol=1e-5, rtol=1e-5)
    assert bool(jnp.all(ok3))

    print("KERNEL_OK")
</pallas_src>

<mosaic_0001>
module attributes {stable_mosaic.version = 11 : i64} {
  func.func @_add_kernel(%arg0: i32, %arg1: memref<2x128xf32, #tpu.memory_space<vmem>>, %arg2: memref<2x128xf32, #tpu.memory_space<vmem>>, %arg3: memref<2x128xf32, #tpu.memory_space<vmem>>) attributes {dimension_semantics = [#tpu.dimension_semantics<parallel>], iteration_bounds = array<i64: 1>, scalar_prefetch = 0 : i64, scratch_operands = 0 : i64, tpu.core_type = #tpu.core_type<tc>, window_params = [{transform_indices = @transform_0, window_bounds = array<i64: 2, 128>}, {transform_indices = @transform_1, window_bounds = array<i64: 2, 128>}, {transform_indices = @transform_2, window_bounds = array<i64: 2, 128>}]} {
    %c0 = arith.constant 0 : index
    %c0_0 = arith.constant 0 : index
    %0 = vector.load %arg1[%c0, %c0_0] : memref<2x128xf32, #tpu.memory_space<vmem>>, vector<2x128xf32>
    %c0_1 = arith.constant 0 : index
    %c0_2 = arith.constant 0 : index
    %1 = vector.load %arg2[%c0_1, %c0_2] : memref<2x128xf32, #tpu.memory_space<vmem>>, vector<2x128xf32>
    %2 = arith.addf %0, %1 : vector<2x128xf32>
    %c0_3 = arith.constant 0 : index
    %c0_4 = arith.constant 0 : index
    %3 = vector.load %arg3[%c0_3, %c0_4] : memref<2x128xf32, #tpu.memory_space<vmem>>, vector<2x128xf32>
    tpu.vector_store %arg3[%c0_3, %c0_4], %2 {strides = array<i32>} : memref<2x128xf32, #tpu.memory_space<vmem>>, vector<2x128xf32>,
    return
  }
  func.func @transform_0(%arg0: i32) -> (i32, i32) {
    %c0_i32 = arith.constant 0 : i32
    %c0_i32_0 = arith.constant 0 : i32
    return %arg0, %c0_i32 : i32, i32
  }
  func.func @transform_1(%arg0: i32) -> (i32, i32) {
    %c0_i32 = arith.constant 0 : i32
    %c0_i32_0 = arith.constant 0 : i32
    return %arg0, %c0_i32 : i32, i32
  }
  func.func @transform_2(%arg0: i32) -> (i32, i32) {
    %c0_i32 = arith.constant 0 : i32
    %c0_i32_0 = arith.constant 0 : i32
    return %arg0, %c0_i32 : i32, i32
  }
}

</mosaic_0001>

<bundles_post_ra>
// kernel: tpu_custom_call.1
= control target key start
LH: loop header
LB: loop body
LE: loop exit
PB: predicated region body
PF: predicated region fallthrough
CT: control target
= control target key end

     0   :  { %7 = vsyncpa [#allocation3], 0  ;;  %s152_s0 = inlined_call_operand.hbm [shape: f32[2,128], index: 0, kind: input, shape index: {}]   ;;  %s153_s1 = inlined_call_operand.hbm [shape: f32[2,128], index: 1, kind: input, shape index: {}]   ;;  %s154_s2 = inlined_call_operand.hbm [shape: f32[2,128], index: 2, kind: output, shape index: {}]  }
   0x1   :  { %8 = vsyncpa [#allocation6], 0 }
   0x2   :  { %9 = vsyncpa [#allocation4], 0  ;;  %s125_s9 = smov [#allocation2]   ;;  %s126_s11 = smov [#allocation5]  }
   0x3   :  { %s16_s10 = sshll.u32 %s125_s9, 4  ;;  %s26_s12 = sshll.u32 %s126_s11, 4  ;;  %s17_s10 = int_to_ptr.vmem [resolvable:$true] %s16_s10  ;;  %s27_s12 = int_to_ptr.vmem [resolvable:$true] %s26_s12 }
   0x4   :  { %s67_s13 = scalar_lea.vmem %s17_s10, 32  ;;  %p72_p1 = scmp.lt.s32.totalorder %s17_s10, %s17_s10 }
   0x5   :  { %p68_p0 = scmp.ne.s32.totalorder %s17_s10, %s67_s13  ;;  %p73_p2 = scmp.lt.s32.totalorder %s67_s13, %s67_s13 }
   0x7   :  { %p74_p3 = por %p73_p2, %p72_p1 }
   0x9   :  { %p75_p4 = pnand %p74_p3, %p68_p0 }
   0xb   :  { %78 = shalt.err (!%p75_p4)
}
   0xc   :  { %19 = dma.hbm_to_vmem [thread:$0]  %s152_s0, 32, %s17_s10, [#allocation3]  }
   0xd   :  { %s87_s16 = scalar_lea.vmem %s27_s12, 32  ;;  %p92_p6 = scmp.lt.s32.totalorder %s27_s12, %s27_s12 }
   0xe   :  { %p88_p5 = scmp.ne.s32.totalorder %s27_s12, %s87_s16  ;;  %p93_p7 = scmp.lt.s32.totalorder %s87_s16, %s87_s16 }
  0x10   :  { %p94_p8 = por %p93_p7, %p92_p6 }
  0x12   :  { %p95_p9 = pnand %p94_p8, %p88_p5 }
  0x14   :  { %98 = shalt.err (!%p95_p9)
}
  0x15   :  { %29 = dma.hbm_to_vmem [thread:$0]  %s153_s1, 32, %s27_s12, [#allocation6]  }
  0x16   :  { %119 = dma.done.wait [#allocation3], 32  }
  0x17   :  { %120 = vsyncadd [#allocation3], 4294967264 }
  0x18   :  { %121 = dma.done.wait [#allocation6], 32  }
  0x19   :  { %122 = vsyncadd [#allocation6], 4294967264  ;;  %s127_s19 = smov [#allocation7]   ;;  %v36_v0 = vld [vmem:[#allocation2] sm:$0x3] }
  0x1a   :  { %s46_s20 = sshll.u32 %s127_s19, 4  ;;  %v37_v1 = vld [vmem:[#allocation5] sm:$0x3]  ;;  %s47_s20 = int_to_ptr.vmem [resolvable:$true] %s46_s20 }
  0x1b   :  { %v38_v2 = vadd.f32 %v37_v1, %v36_v0  ;;  %s99_s0 = scalar_lea.vmem %s47_s20, 32  ;;  %p104_p11 = scmp.lt.s32.totalorder %s47_s20, %s47_s20 }
  0x1c   :  { %p100_p10 = scmp.ne.s32.totalorder %s47_s20, %s99_s0  ;;  %p105_p12 = scmp.lt.s32.totalorder %s99_s0, %s99_s0 }
  0x1d   :  { %39 = vst [vmem:[#allocation7] sm:$0x3] %v38_v2 }
  0x1e   :  { %p106_p13 = por %p105_p12, %p104_p11 }
  0x20   :  { %p107_p0 = pnand %p106_p13, %p100_p10 }
  0x22   :  { %110 = shalt.err (!%p107_p0)
}
  0x23   :  { %49 = dma.vmem_to_hbm [thread:$0]  %s47_s20, 32, %s154_s2, [#allocation4]  }
  0x24   :  { %123 = dma.done.wait [#allocation4], 32  }
  0x25   :  { %124 = vsyncadd [#allocation4], 4294967264 }
  0x26   :  { %53 = vsyncpa [#allocation3], 1 }
  0x27   :  { %54 = vsyncpa [#allocation6], 1 }
  0x28   :  { %55 = vsyncpa [#allocation4], 1 }

</bundles_post_ra>
